<compile_context>
chip_gen: v5e
topology: v5e:2x2
jax: 0.10.0
libtpu: 0.0.40
codegen_flags: <defaults>
</compile_context>

<pallas_src>
import functools
import math

import jax
import jax.numpy as jnp
import numpy as np
from jax.experimental import pallas as pl
from jax.experimental.pallas import tpu as pltpu


# -----------------------------------------------------------------------------
# Pallas kernel
# -----------------------------------------------------------------------------
def _custom_loss_kernel(*refs, cfg):
    """CustomLoss.forward, feature-major layout, batch tiled along the grid.

    PINN variant refs : x(2N,Bt), cbf_p, att_p, cbf_t, att_t, cbf_lv, att_lv
                        (each (1,Bt)), consts(N,7) | out(1,1 SMEM) | acc(4 SMEM)
    non-PINN variant  : cbf_p .. att_lv (1,Bt)     | out(1,1 SMEM) | acc(4 SMEM)
    """
    if cfg["enable_pinn"]:
        (x_ref, cbf_p_ref, att_p_ref, cbf_t_ref, att_t_ref,
         cbf_lv_ref, att_lv_ref, c_ref, o_ref, acc_ref) = refs
    else:
        (cbf_p_ref, att_p_ref, cbf_t_ref, att_t_ref,
         cbf_lv_ref, att_lv_ref, o_ref, acc_ref) = refs
        x_ref = c_ref = None

    step = pl.program_id(0)
    last = pl.num_programs(0) - 1

    @pl.when(step == 0)
    def _init():
        acc_ref[0] = 0.0
        acc_ref[1] = 0.0
        acc_ref[2] = 0.0
        acc_ref[3] = 0.0

    cbf_p = cbf_p_ref[...]      # (1, Bt)  batch on lanes
    att_p = att_p_ref[...]
    cbf_t = cbf_t_ref[...]
    att_t = att_t_ref[...]
    cbf_lv = cbf_lv_ref[...]
    att_lv = att_lv_ref[...]

    # ---- Gaussian NLL + regression-focal weight on ATT ----------------------
    cbf_nll = 0.5 * (jnp.exp(-cbf_lv) * (cbf_p - cbf_t) ** 2 + cbf_lv)
    att_nll = 0.5 * (jnp.exp(-att_lv) * (att_p - att_t) ** 2 + att_lv)
    if cfg["focal_gamma"] > 0.0:
        att_err = jnp.clip(jnp.abs(att_p - att_t) * 0.25, 0.0, 1.0)
        # (att_err + 0.1) ** gamma; base >= 0.1 > 0 so exp/log on the EUP.
        focal_w = jnp.exp(cfg["focal_gamma"] * jnp.log(att_err + 0.1))
    else:
        focal_w = 1.0
    weighted = (cfg["w_cbf"] * cbf_nll
                + (cfg["w_att"] * cfg["att_epoch_weight"]) * att_nll * focal_w)
    acc_ref[0] += jnp.sum(weighted)

    if cfg["log_var_reg_lambda"] > 0.0:
        acc_ref[1] += jnp.sum(cbf_lv * cbf_lv) + jnp.sum(att_lv * att_lv)

    # ---- PINN reconstruction loss (ASL kinetic physics decoder) -------------
    if cfg["enable_pinn"]:
        n = cfg["n_plds"]
        c = c_ref[...]                        # (N, 7) per-PLD constants
        plds = c[:, 0:1]                      # (N, 1)
        exp_pld = c[:, 1:2]                   # exp(-plds/T1)        (hoisted)
        pld_ms_exp = c[:, 2:3]                # (plds/1000)*exp_pld  (hoisted)
        pc_mean = c[:, 3:4]
        inv_pc_std = c[:, 4:5]                # 1/(std+1e-6)         (hoisted)
        vs_mean = c[:, 5:6]
        inv_vs_std = c[:, 6:7]

        # de-normalized predictions, batch on lanes
        pred_cbf = cbf_p * cfg["y_std_cbf"] + cfg["y_mean_cbf"]       # (1,Bt)
        pred_att = att_p * cfg["y_std_att"] + cfg["y_mean_att"]       # (1,Bt)
        pc_pref = pred_cbf * cfg["pc_pref_const"]   # includes /6000 fold
        vs_pref = pred_cbf * cfg["vs_pref_const"]   # includes /6000 fold

        # only data-dependent exp left for PCASL: exp(-ATT/T1) on B elements
        exp_att = jnp.exp(pred_att * cfg["neg_inv_t1"])               # (1,Bt)

        # PCASL kinetic model: (N,1) x (1,Bt) -> (N,Bt)
        full_bolus = (pc_pref * cfg["one_minus_exp_tau"]) * exp_pld
        trailing = pc_pref * (exp_att - cfg["exp_tau"] * exp_pld)
        cond_full = plds >= pred_att
        cond_trail = jnp.logical_and(plds < pred_att,
                                     plds >= pred_att - cfg["T_tau"])
        pcasl = jnp.where(cond_full, full_bolus, 0.0)
        pcasl = jnp.where(cond_trail, trailing, pcasl)

        # VSASL kinetic model
        vsasl = jnp.where(plds <= pred_att,
                          vs_pref * pld_ms_exp,
                          (vs_pref * pred_att * 1e-3) * exp_pld)

        pc_recon = (pcasl - pc_mean) * inv_pc_std
        vs_recon = (vsasl - vs_mean) * inv_vs_std

        x = x_ref[...]                        # (2N, Bt) feature-major
        x_pc = x[:n, :]
        x_vs = x[n:, :]

        # PINN loss weights (forward value of the no_grad block)
        att_true_ms = att_t * cfg["y_std_att"] + cfg["y_mean_att"]    # (1,Bt)
        d = plds - att_true_ms                                        # (N,Bt)
        w_pc = jnp.exp((d * d) * cfg["neg_inv_2sig2"])
        sq = (pc_recon - x_pc) ** 2 + (vs_recon - x_vs) ** 2
        acc_ref[2] += jnp.sum(w_pc * sq)      # PINN numerator partial
        acc_ref[3] += jnp.sum(w_pc)           # PINN denominator partial

    # ---- finalize ------------------------------------------------------------
    @pl.when(step == last)
    def _finalize():
        total = acc_ref[0] * cfg["inv_b"]
        if cfg["log_var_reg_lambda"] > 0.0:
            total = total + (cfg["log_var_reg_lambda"] * cfg["inv_b"]) * acc_ref[1]
        if cfg["enable_pinn"]:
            # == mean(w * (recon - sig)^2) with w renormalized to sum to numel
            pinn = acc_ref[2] / (2.0 * acc_ref[3] + 1e-9)
            total = total + cfg["pinn_weight"] * pinn
        o_ref[0, 0] = total


# -----------------------------------------------------------------------------
# Host-side wrapper / factory
# -----------------------------------------------------------------------------
def _pick_batch_tile(b, max_bt=2048):
    """Whole batch in one resident block when small; 128-lane tiles otherwise."""
    if b <= max_bt:
        return b
    for bt in (2048, 1024, 512, 256, 128):
        if bt <= max_bt and b % bt == 0:
            return bt
    return b     # odd batch size: fall back to a single resident block


def make_custom_loss(*, w_cbf=1.0, w_att=1.0, log_var_reg_lambda=0.0,
                     focal_gamma=1.5, pinn_weight=0.0, model_params=None,
                     norm_stats=None, att_epoch_weight_schedule=None,
                     pinn_att_weighting_sigma=500.0, epoch=0):
    """Build a jitted CustomLoss.forward (epoch fixed) backed by one Pallas kernel."""
    model_params = model_params if model_params is not None else {}
    schedule = att_epoch_weight_schedule or (lambda _e: 1.0)
    has_stats = bool(norm_stats)
    has_mp = bool(model_params)
    enable_pinn = (pinn_weight > 0.0) and has_stats and has_mp and (epoch > 10)

    n_plds = len(model_params.get("pld_values", [])) if has_mp else 0
    n_plds = max(n_plds, 1)

    # Physics constants resolved to Python floats (baked at trace time).
    t1 = float(model_params.get("T1_artery", 1850.0))
    t_tau = float(model_params.get("T_tau", 1800.0))
    alpha_pcasl = float(model_params.get("alpha_PCASL", 0.85))
    alpha_vsasl = float(model_params.get("alpha_VSASL", 0.56))
    alpha_bs1, t2_factor, lambda_blood, m0_b = 1.0, 1.0, 0.9, 1.0
    alpha1 = alpha_pcasl * alpha_bs1 ** 4
    alpha2 = alpha_vsasl * alpha_bs1 ** 3
    exp_tau = math.exp(-t_tau / t1)

    base_cfg = dict(
        n_plds=n_plds,
        enable_pinn=enable_pinn,
        w_cbf=float(w_cbf),
        w_att=float(w_att),
        log_var_reg_lambda=float(log_var_reg_lambda),
        focal_gamma=float(focal_gamma),
        pinn_weight=float(pinn_weight),
        att_epoch_weight=float(schedule(epoch)),
        T_tau=t_tau,
        neg_inv_t1=-1.0 / t1,
        exp_tau=exp_tau,
        one_minus_exp_tau=1.0 - exp_tau,
        # prefactors with 2*M0/lambda, T1/1000, and the /6000 CBF->CGS fold
        pc_pref_const=2.0 * m0_b * alpha1 / lambda_blood * t1 / 1000.0
                      * t2_factor / 6000.0,
        vs_pref_const=2.0 * m0_b * alpha2 / lambda_blood * t2_factor / 6000.0,
        neg_inv_2sig2=-1.0 / (2.0 * float(pinn_att_weighting_sigma) ** 2),
        y_mean_cbf=float(norm_stats["y_mean_cbf"]) if has_stats else 0.0,
        y_std_cbf=float(norm_stats["y_std_cbf"]) if has_stats else 1.0,
        y_mean_att=float(norm_stats["y_mean_att"]) if has_stats else 0.0,
        y_std_att=float(norm_stats["y_std_att"]) if has_stats else 1.0,
    )

    # Hoisted per-PLD constants packed as (N, 7): one tiny VMEM blob, loaded once.
    if enable_pinn:
        plds_np = np.asarray(model_params["pld_values"], np.float32)
        exp_pld_np = np.exp(-plds_np / np.float32(t1)).astype(np.float32)
        consts_np = np.stack([
            plds_np,
            exp_pld_np,
            (plds_np / np.float32(1000.0)) * exp_pld_np,
            np.asarray(norm_stats["pcasl_mean"], np.float32),
            np.float32(1.0) / (np.asarray(norm_stats["pcasl_std"], np.float32)
                               + np.float32(1e-6)),
            np.asarray(norm_stats["vsasl_mean"], np.float32),
            np.float32(1.0) / (np.asarray(norm_stats["vsasl_std"], np.float32)
                               + np.float32(1e-6)),
        ], axis=1).astype(np.float32)
        consts = jnp.asarray(consts_np)                       # (N, 7)
    else:
        consts = None

    @jax.jit
    def loss_fn(normalized_input_signal, cbf_pred_norm, att_pred_norm,
                cbf_true_norm, att_true_norm, cbf_log_var, att_log_var):
        b = cbf_pred_norm.shape[0]
        bt = _pick_batch_tile(b)
        num_bt = b // bt
        cfg = dict(base_cfg, inv_b=1.0 / float(b))
        kernel = functools.partial(_custom_loss_kernel, cfg=cfg)

        # (B,1) -> (1,B): same memory order (free reshape); batch rides lanes.
        row = lambda t: t.astype(jnp.float32).reshape(1, -1)
        params = [row(cbf_pred_norm), row(att_pred_norm), row(cbf_true_norm),
                  row(att_true_norm), row(cbf_log_var), row(att_log_var)]
        param_spec = pl.BlockSpec((1, bt), lambda i: (0, i))

        if enable_pinn:
            n2 = 2 * n_plds
            # feature-major raw-signal slab (2N, B)
            x_t = normalized_input_signal[:, :n2].astype(jnp.float32).T
            inputs = [x_t] + params + [consts]
            in_specs = ([pl.BlockSpec((n2, bt), lambda i: (0, i))]
                        + [param_spec] * 6
                        + [pl.BlockSpec(consts.shape, lambda i: (0, 0))])
        else:
            # PINN off: x and consts are dead -> drop their DMAs entirely.
            inputs = params
            in_specs = [param_spec] * 6

        out = pl.pallas_call(
            kernel,
            out_shape=jax.ShapeDtypeStruct((1, 1), jnp.float32),
            grid=(num_bt,),
            in_specs=in_specs,
            out_specs=pl.BlockSpec((1, 1), lambda i: (0, 0),
                                   memory_space=pltpu.MemorySpace.SMEM),
            scratch_shapes=[pltpu.SMEM((4,), jnp.float32)],
            compiler_params=pltpu.CompilerParams(
                dimension_semantics=("arbitrary",)),
        )(*inputs)
        return out[0, 0]

    return loss_fn


# -----------------------------------------------------------------------------
# Pure-JAX reference (direct transcription of the PyTorch module)
# -----------------------------------------------------------------------------
def _kinetic_model_ref(pred_cbf_norm, pred_att_norm, norm_stats, model_params):
    pred_cbf = pred_cbf_norm * norm_stats["y_std_cbf"] + norm_stats["y_mean_cbf"]
    pred_att = pred_att_norm * norm_stats["y_std_att"] + norm_stats["y_mean_att"]
    pred_cbf_cgs = pred_cbf / 6000.0
    plds = jnp.asarray(model_params["pld_values"], jnp.float32)
    t1 = jnp.float32(model_params["T1_artery"])
    t_tau = jnp.float32(model_params["T_tau"])
    alpha_pcasl = jnp.float32(model_params["alpha_PCASL"])
    alpha_vsasl = jnp.float32(model_params["alpha_VSASL"])
    alpha_bs1, t2_factor, lambda_blood, m0_b = 1.0, 1.0, 0.9, 1.0
    b = pred_cbf_cgs.shape[0]
    n = plds.shape[0]
    plds_b = jnp.broadcast_to(plds[None, :], (b, n))

    alpha1 = alpha_pcasl * alpha_bs1 ** 4
    pc_pref = 2 * m0_b * pred_cbf_cgs * alpha1 / lambda_blood * t1 / 1000 * t2_factor
    cond_full = plds_b >= pred_att
    cond_trail = (plds_b < pred_att) & (plds_b >= pred_att - t_tau)
    pcasl_sig = jnp.zeros_like(plds_b)
    pcasl_sig = jnp.where(cond_full,
                          pc_pref * jnp.exp(-plds_b / t1) * (1 - jnp.exp(-t_tau / t1)),
                          pcasl_sig)
    pcasl_sig = jnp.where(cond_trail,
                          pc_pref * (jnp.exp(-pred_att / t1)
                                     - jnp.exp(-(t_tau + plds_b) / t1)),
                          pcasl_sig)

    alpha2 = alpha_vsasl * alpha_bs1 ** 3
    vs_pref = 2 * m0_b * pred_cbf_cgs * alpha2 / lambda_blood * t2_factor
    cond_le = plds_b <= pred_att
    vsasl_sig = jnp.where(cond_le,
                          vs_pref * (plds_b / 1000) * jnp.exp(-plds_b / t1),
                          vs_pref * (pred_att / 1000) * jnp.exp(-plds_b / t1))

    recon = jnp.concatenate([pcasl_sig, vsasl_sig], axis=1)
    pc_mean = jnp.asarray(norm_stats["pcasl_mean"], jnp.float32)
    pc_std = jnp.asarray(norm_stats["pcasl_std"], jnp.float32)
    vs_mean = jnp.asarray(norm_stats["vsasl_mean"], jnp.float32)
    vs_std = jnp.asarray(norm_stats["vsasl_std"], jnp.float32)
    pc_norm = (recon[:, :n] - pc_mean) / (pc_std + 1e-6)
    vs_norm = (recon[:, n:] - vs_mean) / (vs_std + 1e-6)
    return jnp.concatenate([pc_norm, vs_norm], axis=1)


def custom_loss_ref(x, cbf_p, att_p, cbf_t, att_t, cbf_lv, att_lv, *, epoch,
                    w_cbf, w_att, log_var_reg_lambda, focal_gamma, pinn_weight,
                    model_params, norm_stats, att_epoch_weight_schedule,
                    pinn_att_weighting_sigma):
    cbf_nll = 0.5 * (jnp.exp(-cbf_lv) * (cbf_p - cbf_t) ** 2 + cbf_lv)
    att_nll = 0.5 * (jnp.exp(-att_lv) * (att_p - att_t) ** 2 + att_lv)
    focal_w = jnp.ones_like(att_nll)
    if focal_gamma > 0:
        att_res = jnp.abs(att_p - att_t)
        att_err = jnp.clip(att_res / 4.0, 0.0, 1.0)
        focal_w = jnp.power(att_err + 0.1, focal_gamma)
    weighted_cbf = w_cbf * cbf_nll
    factor = att_epoch_weight_schedule(epoch)
    weighted_att = w_att * att_nll * focal_w * factor
    total_param = jnp.mean(weighted_cbf + weighted_att)

    reg = 0.0
    if log_var_reg_lambda > 0:
        reg = log_var_reg_lambda * (jnp.mean(cbf_lv ** 2) + jnp.mean(att_lv ** 2))

    pinn = 0.0
    if pinn_weight > 0 and norm_stats and model_params and epoch > 10:
        recon = _kinetic_model_ref(cbf_p, att_p, norm_stats, model_params)
        plds = jnp.asarray(model_params["pld_values"], jnp.float32)
        att_true_ms = att_t * norm_stats["y_std_att"] + norm_stats["y_mean_att"]
        plds_b = jnp.broadcast_to(plds[None, :],
                                  (att_true_ms.shape[0], plds.shape[0]))
        w_pc = jnp.exp(-(plds_b - att_true_ms) ** 2
                       / (2 * pinn_att_weighting_sigma ** 2))
        w = jnp.concatenate([w_pc, w_pc], axis=1)
        w = w * w.size / (jnp.sum(w) + 1e-9)
        n_raw = 2 * plds.shape[0]
        sig = x[:, :n_raw]
        pinn = jnp.mean(w * (recon - sig) ** 2)
    return total_param + reg + pinn_weight * pinn


# -----------------------------------------------------------------------------
# Main
# -----------------------------------------------------------------------------
if __name__ == "__main__":
    key = jax.random.PRNGKey(0)
    ks = jax.random.split(key, 10)

    B = 8
    N_PLDS = 6
    N_ENG = 4
    F = 2 * N_PLDS + N_ENG          # 16

    model_params = {
        "pld_values": [500.0, 1000.0, 1500.0, 2000.0, 2500.0, 3000.0],
        "T1_artery": 1850.0,
        "T_tau": 1800.0,
        "alpha_PCASL": 0.85,
        "alpha_VSASL": 0.56,
    }
    norm_stats = {
        "pcasl_mean": np.asarray(0.005 + 0.002 * jax.random.normal(ks[0], (N_PLDS,)),
                                 np.float32),
        "pcasl_std": np.asarray(0.010 + 0.005 * jnp.abs(jax.random.normal(ks[1], (N_PLDS,))),
                                np.float32),
        "vsasl_mean": np.asarray(0.004 + 0.002 * jax.random.normal(ks[2], (N_PLDS,)),
                                 np.float32),
        "vsasl_std": np.asarray(0.008 + 0.004 * jnp.abs(jax.random.normal(ks[3], (N_PLDS,))),
                                np.float32),
        "y_mean_cbf": 60.0, "y_std_cbf": 20.0,
        "y_mean_att": 1600.0, "y_std_att": 400.0,
    }

    x = jax.random.normal(ks[4], (B, F), jnp.float32)
    cbf_pred = jax.random.normal(ks[5], (B, 1), jnp.float32)
    att_pred = jax.random.normal(ks[6], (B, 1), jnp.float32)
    cbf_true = cbf_pred + 0.3 * jax.random.normal(ks[7], (B, 1), jnp.float32)
    att_true = att_pred + 0.3 * jax.random.normal(ks[8], (B, 1), jnp.float32)
    lvs = 0.5 * jax.random.normal(ks[9], (B, 2), jnp.float32)
    cbf_lv = lvs[:, 0:1]
    att_lv = lvs[:, 1:2]

    epoch = 25                                      # > 10 -> PINN branch active
    schedule = lambda e: 1.0 / (1.0 + 0.02 * e)     # att epoch weight schedule

    # --- variant 1: PINN enabled ---------------------------------------------
    loss_fn = make_custom_loss(
        w_cbf=1.0, w_att=1.0, log_var_reg_lambda=0.01, focal_gamma=1.5,
        pinn_weight=0.3, model_params=model_params, norm_stats=norm_stats,
        att_epoch_weight_schedule=schedule,
        pinn_att_weighting_sigma=500.0, epoch=epoch)
    loss = jax.block_until_ready(
        loss_fn(x, cbf_pred, att_pred, cbf_true, att_true, cbf_lv, att_lv))
    ref = custom_loss_ref(
        x, cbf_pred, att_pred, cbf_true, att_true, cbf_lv, att_lv,
        epoch=epoch, w_cbf=1.0, w_att=1.0, log_var_reg_lambda=0.01,
        focal_gamma=1.5, pinn_weight=0.3, model_params=model_params,
        norm_stats=norm_stats, att_epoch_weight_schedule=schedule,
        pinn_att_weighting_sigma=500.0)
    np.testing.assert_allclose(np.asarray(loss), np.asarray(ref),
                               rtol=1e-4, atol=1e-6)

    # --- variant 2: PINN disabled (x / consts DMAs dropped) ------------------
    loss_fn_np = make_custom_loss(
        w_cbf=1.0, w_att=1.0, log_var_reg_lambda=0.01, focal_gamma=1.5,
        pinn_weight=0.0, model_params=model_params, norm_stats=norm_stats,
        att_epoch_weight_schedule=schedule,
        pinn_att_weighting_sigma=500.0, epoch=epoch)
    loss_np = jax.block_until_ready(
        loss_fn_np(x, cbf_pred, att_pred, cbf_true, att_true, cbf_lv, att_lv))
    ref_np = custom_loss_ref(
        x, cbf_pred, att_pred, cbf_true, att_true, cbf_lv, att_lv,
        epoch=epoch, w_cbf=1.0, w_att=1.0, log_var_reg_lambda=0.01,
        focal_gamma=1.5, pinn_weight=0.0, model_params=model_params,
        norm_stats=norm_stats, att_epoch_weight_schedule=schedule,
        pinn_att_weighting_sigma=500.0)
    np.testing.assert_allclose(np.asarray(loss_np), np.asarray(ref_np),
                               rtol=1e-4, atol=1e-6)

    print("KERNEL_OK")
</pallas_src>

<mosaic_0001>
module attributes {stable_mosaic.version = 11 : i64} {
  func.func @_custom_loss_kernel(%arg0: i32, %arg1: memref<12x8xf32, #tpu.memory_space<vmem>>, %arg2: memref<1x8xf32, #tpu.memory_space<vmem>>, %arg3: memref<1x8xf32, #tpu.memory_space<vmem>>, %arg4: memref<1x8xf32, #tpu.memory_space<vmem>>, %arg5: memref<1x8xf32, #tpu.memory_space<vmem>>, %arg6: memref<1x8xf32, #tpu.memory_space<vmem>>, %arg7: memref<1x8xf32, #tpu.memory_space<vmem>>, %arg8: memref<6x7xf32, #tpu.memory_space<vmem>>, %arg9: memref<1x1xf32, #tpu.memory_space<smem>>, %arg10: memref<4xf32, #tpu.memory_space<smem>>) attributes {dimension_semantics = [#tpu.dimension_semantics<arbitrary>], iteration_bounds = array<i64: 1>, scalar_prefetch = 0 : i64, scratch_operands = 1 : i64, tpu.core_type = #tpu.core_type<tc>, window_params = [{transform_indices = @transform_0, window_bounds = array<i64: 12, 8>}, {transform_indices = @transform_1, window_bounds = array<i64: 1, 8>}, {transform_indices = @transform_2, window_bounds = array<i64: 1, 8>}, {transform_indices = @transform_3, window_bounds = array<i64: 1, 8>}, {transform_indices = @transform_4, window_bounds = array<i64: 1, 8>}, {transform_indices = @transform_5, window_bounds = array<i64: 1, 8>}, {transform_indices = @transform_6, window_bounds = array<i64: 1, 8>}, {pipeline_mode = #tpu.pipeline_mode<synchronous>, transform_indices = @transform_7, window_bounds = array<i64: 6, 7>}, {transform_indices = @transform_8, window_bounds = array<i64: 1, 1>}]} {
    %c0_i32 = arith.constant 0 : i32
    %0 = arith.cmpi eq, %arg0, %c0_i32 : i32
    %1 = arith.extui %0 : i1 to i32
    %c0_i32_0 = arith.constant 0 : i32
    %2 = arith.cmpi ne, %1, %c0_i32_0 : i32
    scf.if %2 {
      %cst_53 = arith.constant 0.000000e+00 : f32
      %c0_54 = arith.constant 0 : index
      %176 = memref.load %arg10[%c0_54] : memref<4xf32, #tpu.memory_space<smem>>
      memref.store %cst_53, %arg10[%c0_54] : memref<4xf32, #tpu.memory_space<smem>>
      %cst_55 = arith.constant 0.000000e+00 : f32
      %c1_56 = arith.constant 1 : index
      %177 = memref.load %arg10[%c1_56] : memref<4xf32, #tpu.memory_space<smem>>
      memref.store %cst_55, %arg10[%c1_56] : memref<4xf32, #tpu.memory_space<smem>>
      %cst_57 = arith.constant 0.000000e+00 : f32
      %c2_58 = arith.constant 2 : index
      %178 = memref.load %arg10[%c2_58] : memref<4xf32, #tpu.memory_space<smem>>
      memref.store %cst_57, %arg10[%c2_58] : memref<4xf32, #tpu.memory_space<smem>>
      %cst_59 = arith.constant 0.000000e+00 : f32
      %c3_60 = arith.constant 3 : index
      %179 = memref.load %arg10[%c3_60] : memref<4xf32, #tpu.memory_space<smem>>
      memref.store %cst_59, %arg10[%c3_60] : memref<4xf32, #tpu.memory_space<smem>>
    } else {
    }
    %c0 = arith.constant 0 : index
    %c0_1 = arith.constant 0 : index
    %3 = vector.load %arg2[%c0, %c0_1] : memref<1x8xf32, #tpu.memory_space<vmem>>, vector<1x8xf32>
    %c0_2 = arith.constant 0 : index
    %c0_3 = arith.constant 0 : index
    %4 = vector.load %arg3[%c0_2, %c0_3] : memref<1x8xf32, #tpu.memory_space<vmem>>, vector<1x8xf32>
    %c0_4 = arith.constant 0 : index
    %c0_5 = arith.constant 0 : index
    %5 = vector.load %arg4[%c0_4, %c0_5] : memref<1x8xf32, #tpu.memory_space<vmem>>, vector<1x8xf32>
    %c0_6 = arith.constant 0 : index
    %c0_7 = arith.constant 0 : index
    %6 = vector.load %arg5[%c0_6, %c0_7] : memref<1x8xf32, #tpu.memory_space<vmem>>, vector<1x8xf32>
    %c0_8 = arith.constant 0 : index
    %c0_9 = arith.constant 0 : index
    %7 = vector.load %arg6[%c0_8, %c0_9] : memref<1x8xf32, #tpu.memory_space<vmem>>, vector<1x8xf32>
    %c0_10 = arith.constant 0 : index
    %c0_11 = arith.constant 0 : index
    %8 = vector.load %arg7[%c0_10, %c0_11] : memref<1x8xf32, #tpu.memory_space<vmem>>, vector<1x8xf32>
    %cst = arith.constant 0.000000e+00 : f32
    %9 = vector.broadcast %cst : f32 to vector<1x8xf32>
    %10 = arith.subf %9, %7 : vector<1x8xf32>
    %11 = math.exp %10 : vector<1x8xf32>
    %12 = arith.subf %3, %5 : vector<1x8xf32>
    %13 = arith.mulf %12, %12 : vector<1x8xf32>
    %14 = arith.mulf %11, %13 : vector<1x8xf32>
    %15 = arith.addf %14, %7 : vector<1x8xf32>
    %cst_12 = arith.constant 5.000000e-01 : f32
    %16 = vector.broadcast %cst_12 : f32 to vector<1x8xf32>
    %17 = arith.mulf %16, %15 : vector<1x8xf32>
    %cst_13 = arith.constant 0.000000e+00 : f32
    %18 = vector.broadcast %cst_13 : f32 to vector<1x8xf32>
    %19 = arith.subf %18, %8 : vector<1x8xf32>
    %20 = math.exp %19 : vector<1x8xf32>
    %21 = arith.subf %4, %6 : vector<1x8xf32>
    %22 = arith.mulf %21, %21 : vector<1x8xf32>
    %23 = arith.mulf %20, %22 : vector<1x8xf32>
    %24 = arith.addf %23, %8 : vector<1x8xf32>
    %cst_14 = arith.constant 5.000000e-01 : f32
    %25 = vector.broadcast %cst_14 : f32 to vector<1x8xf32>
    %26 = arith.mulf %25, %24 : vector<1x8xf32>
    %27 = arith.subf %4, %6 : vector<1x8xf32>
    %28 = math.absf %27 : vector<1x8xf32>
    %cst_15 = arith.constant 2.500000e-01 : f32
    %29 = vector.broadcast %cst_15 : f32 to vector<1x8xf32>
    %30 = arith.mulf %28, %29 : vector<1x8xf32>
    %cst_16 = arith.constant 0.000000e+00 : f32
    %cst_17 = arith.constant 1.000000e+00 : f32
    %31 = vector.broadcast %cst_16 : f32 to vector<1x8xf32>
    %32 = arith.maximumf %31, %30 : vector<1x8xf32>
    %33 = vector.broadcast %cst_17 : f32 to vector<1x8xf32>
    %34 = arith.minimumf %33, %32 : vector<1x8xf32>
    %cst_18 = arith.constant 1.000000e-01 : f32
    %35 = vector.broadcast %cst_18 : f32 to vector<1x8xf32>
    %36 = arith.addf %34, %35 : vector<1x8xf32>
    %37 = math.log %36 : vector<1x8xf32>
    %cst_19 = arith.constant 1.500000e+00 : f32
    %38 = vector.broadcast %cst_19 : f32 to vector<1x8xf32>
    %39 = arith.mulf %38, %37 : vector<1x8xf32>
    %40 = math.exp %39 : vector<1x8xf32>
    %cst_20 = arith.constant 1.000000e+00 : f32
    %41 = vector.broadcast %cst_20 : f32 to vector<1x8xf32>
    %42 = arith.mulf %41, %17 : vector<1x8xf32>
    %cst_21 = arith.constant 0.666666686 : f32
    %43 = vector.broadcast %cst_21 : f32 to vector<1x8xf32>
    %44 = arith.mulf %43, %26 : vector<1x8xf32>
    %45 = arith.mulf %44, %40 : vector<1x8xf32>
    %46 = arith.addf %42, %45 : vector<1x8xf32>
    %c0_22 = arith.constant 0 : index
    %47 = memref.load %arg10[%c0_22] : memref<4xf32, #tpu.memory_space<smem>>
    %48 = vector.shape_cast %46 : vector<1x8xf32> to vector<1x1x8xf32>
    %cst_23 = arith.constant dense<0.000000e+00> : vector<1xf32>
    %49 = vector.multi_reduction <add>, %48, %cst_23 [1, 2] : vector<1x1x8xf32> to vector<1xf32>
    %50 = vector.shape_cast %49 : vector<1xf32> to vector<1x1x1xf32>
    %51 = vector.extract %50[0, 0, 0] : f32 from vector<1x1x1xf32>
    %52 = arith.addf %47, %51 : f32
    %c0_24 = arith.constant 0 : index
    %53 = memref.load %arg10[%c0_24] : memref<4xf32, #tpu.memory_space<smem>>
    memref.store %52, %arg10[%c0_24] : memref<4xf32, #tpu.memory_space<smem>>
    %c1 = arith.constant 1 : index
    %54 = memref.load %arg10[%c1] : memref<4xf32, #tpu.memory_space<smem>>
    %55 = arith.mulf %7, %7 : vector<1x8xf32>
    %56 = vector.shape_cast %55 : vector<1x8xf32> to vector<1x1x8xf32>
    %cst_25 = arith.constant dense<0.000000e+00> : vector<1xf32>
    %57 = vector.multi_reduction <add>, %56, %cst_25 [1, 2] : vector<1x1x8xf32> to vector<1xf32>
    %58 = vector.shape_cast %57 : vector<1xf32> to vector<1x1x1xf32>
    %59 = vector.extract %58[0, 0, 0] : f32 from vector<1x1x1xf32>
    %60 = arith.mulf %8, %8 : vector<1x8xf32>
    %61 = vector.shape_cast %60 : vector<1x8xf32> to vector<1x1x8xf32>
    %cst_26 = arith.constant dense<0.000000e+00> : vector<1xf32>
    %62 = vector.multi_reduction <add>, %61, %cst_26 [1, 2] : vector<1x1x8xf32> to vector<1xf32>
    %63 = vector.shape_cast %62 : vector<1xf32> to vector<1x1x1xf32>
    %64 = vector.extract %63[0, 0, 0] : f32 from vector<1x1x1xf32>
    %65 = arith.addf %59, %64 : f32
    %66 = arith.addf %54, %65 : f32
    %c1_27 = arith.constant 1 : index
    %67 = memref.load %arg10[%c1_27] : memref<4xf32, #tpu.memory_space<smem>>
    memref.store %66, %arg10[%c1_27] : memref<4xf32, #tpu.memory_space<smem>>
    %c0_28 = arith.constant 0 : index
    %c0_29 = arith.constant 0 : index
    %68 = vector.load %arg8[%c0_28, %c0_29] : memref<6x7xf32, #tpu.memory_space<vmem>>, vector<6x7xf32>
    %69 = vector.extract_strided_slice %68 {offsets = [0, 0], sizes = [6, 1], strides = [1, 1]} : vector<6x7xf32> to vector<6x1xf32>
    %70 = vector.extract_strided_slice %68 {offsets = [0, 1], sizes = [6, 1], strides = [1, 1]} : vector<6x7xf32> to vector<6x1xf32>
    %71 = vector.extract_strided_slice %68 {offsets = [0, 2], sizes = [6, 1], strides = [1, 1]} : vector<6x7xf32> to vector<6x1xf32>
    %72 = vector.extract_strided_slice %68 {offsets = [0, 3], sizes = [6, 1], strides = [1, 1]} : vector<6x7xf32> to vector<6x1xf32>
    %73 = vector.extract_strided_slice %68 {offsets = [0, 4], sizes = [6, 1], strides = [1, 1]} : vector<6x7xf32> to vector<6x1xf32>
    %74 = vector.extract_strided_slice %68 {offsets = [0, 5], sizes = [6, 1], strides = [1, 1]} : vector<6x7xf32> to vector<6x1xf32>
    %75 = vector.extract_strided_slice %68 {offsets = [0, 6], sizes = [6, 1], strides = [1, 1]} : vector<6x7xf32> to vector<6x1xf32>
    %cst_30 = arith.constant 2.000000e+01 : f32
    %76 = vector.broadcast %cst_30 : f32 to vector<1x8xf32>
    %77 = arith.mulf %3, %76 : vector<1x8xf32>
    %cst_31 = arith.constant 6.000000e+01 : f32
    %78 = vector.broadcast %cst_31 : f32 to vector<1x8xf32>
    %79 = arith.addf %77, %78 : vector<1x8xf32>
    %cst_32 = arith.constant 4.000000e+02 : f32
    %80 = vector.broadcast %cst_32 : f32 to vector<1x8xf32>
    %81 = arith.mulf %4, %80 : vector<1x8xf32>
    %cst_33 = arith.constant 1.600000e+03 : f32
    %82 = vector.broadcast %cst_33 : f32 to vector<1x8xf32>
    %83 = arith.addf %81, %82 : vector<1x8xf32>
    %cst_34 = arith.constant 5.82407403E-4 : f32
    %84 = vector.broadcast %cst_34 : f32 to vector<1x8xf32>
    %85 = arith.mulf %79, %84 : vector<1x8xf32>
    %cst_35 = arith.constant 2.07407415E-4 : f32
    %86 = vector.broadcast %cst_35 : f32 to vector<1x8xf32>
    %87 = arith.mulf %79, %86 : vector<1x8xf32>
    %cst_36 = arith.constant -5.40540554E-4 : f32
    %88 = vector.broadcast %cst_36 : f32 to vector<1x8xf32>
    %89 = arith.mulf %83, %88 : vector<1x8xf32>
    %90 = math.exp %89 : vector<1x8xf32>
    %cst_37 = arith.constant 0.622042298 : f32
    %91 = vector.broadcast %cst_37 : f32 to vector<1x8xf32>
    %92 = arith.mulf %85, %91 : vector<1x8xf32>
    %93 = vector.broadcast %92 : vector<1x8xf32> to vector<6x8xf32>
    %94 = vector.broadcast %70 : vector<6x1xf32> to vector<6x8xf32>
    %95 = arith.mulf %93, %94 : vector<6x8xf32>
    %cst_38 = arith.constant 0.377957702 : f32
    %96 = vector.broadcast %cst_38 : f32 to vector<6x1xf32>
    %97 = arith.mulf %96, %70 : vector<6x1xf32>
    %98 = vector.broadcast %90 : vector<1x8xf32> to vector<6x8xf32>
    %99 = vector.broadcast %97 : vector<6x1xf32> to vector<6x8xf32>
    %100 = arith.subf %98, %99 : vector<6x8xf32>
    %101 = vector.broadcast %85 : vector<1x8xf32> to vector<6x8xf32>
    %102 = arith.mulf %101, %100 : vector<6x8xf32>
    %103 = vector.broadcast %69 : vector<6x1xf32> to vector<6x8xf32>
    %104 = vector.broadcast %83 : vector<1x8xf32> to vector<6x8xf32>
    %105 = arith.cmpf oge, %103, %104 : vector<6x8xf32>
    %106 = vector.broadcast %69 : vector<6x1xf32> to vector<6x8xf32>
    %107 = vector.broadcast %83 : vector<1x8xf32> to vector<6x8xf32>
    %108 = arith.cmpf olt, %106, %107 : vector<6x8xf32>
    %cst_39 = arith.constant 1.800000e+03 : f32
    %109 = vector.broadcast %cst_39 : f32 to vector<1x8xf32>
    %110 = arith.subf %83, %109 : vector<1x8xf32>
    %111 = vector.broadcast %69 : vector<6x1xf32> to vector<6x8xf32>
    %112 = vector.broadcast %110 : vector<1x8xf32> to vector<6x8xf32>
    %113 = arith.cmpf oge, %111, %112 : vector<6x8xf32>
    %114 = arith.andi %108, %113 : vector<6x8xi1>
    %cst_40 = arith.constant 0.000000e+00 : f32
    %115 = vector.broadcast %cst_40 : f32 to vector<6x8xf32>
    %116 = arith.select %105, %95, %115 : vector<6x8xi1>, vector<6x8xf32>
    %117 = arith.select %114, %102, %116 : vector<6x8xi1>, vector<6x8xf32>
    %118 = vector.broadcast %69 : vector<6x1xf32> to vector<6x8xf32>
    %119 = vector.broadcast %83 : vector<1x8xf32> to vector<6x8xf32>
    %120 = arith.cmpf ole, %118, %119 : vector<6x8xf32>
    %121 = vector.broadcast %87 : vector<1x8xf32> to vector<6x8xf32>
    %122 = vector.broadcast %71 : vector<6x1xf32> to vector<6x8xf32>
    %123 = arith.mulf %121, %122 : vector<6x8xf32>
    %124 = arith.mulf %87, %83 : vector<1x8xf32>
    %cst_41 = arith.constant 1.000000e-03 : f32
    %125 = vector.broadcast %cst_41 : f32 to vector<1x8xf32>
    %126 = arith.mulf %124, %125 : vector<1x8xf32>
    %127 = vector.broadcast %126 : vector<1x8xf32> to vector<6x8xf32>
    %128 = vector.broadcast %70 : vector<6x1xf32> to vector<6x8xf32>
    %129 = arith.mulf %127, %128 : vector<6x8xf32>
    %130 = arith.select %120, %123, %129 : vector<6x8xi1>, vector<6x8xf32>
    %131 = vector.broadcast %72 : vector<6x1xf32> to vector<6x8xf32>
    %132 = arith.subf %117, %131 : vector<6x8xf32>
    %133 = vector.broadcast %73 : vector<6x1xf32> to vector<6x8xf32>
    %134 = arith.mulf %132, %133 : vector<6x8xf32>
    %135 = vector.broadcast %74 : vector<6x1xf32> to vector<6x8xf32>
    %136 = arith.subf %130, %135 : vector<6x8xf32>
    %137 = vector.broadcast %75 : vector<6x1xf32> to vector<6x8xf32>
    %138 = arith.mulf %136, %137 : vector<6x8xf32>
    %c0_42 = arith.constant 0 : index
    %c0_43 = arith.constant 0 : index
    %139 = vector.load %arg1[%c0_42, %c0_43] : memref<12x8xf32, #tpu.memory_space<vmem>>, vector<12x8xf32>
    %140 = vector.extract_strided_slice %139 {offsets = [0, 0], sizes = [6, 8], strides = [1, 1]} : vector<12x8xf32> to vector<6x8xf32>
    %141 = vector.extract_strided_slice %139 {offsets = [6, 0], sizes = [6, 8], strides = [1, 1]} : vector<12x8xf32> to vector<6x8xf32>
    %cst_44 = arith.constant 4.000000e+02 : f32
    %142 = vector.broadcast %cst_44 : f32 to vector<1x8xf32>
    %143 = arith.mulf %6, %142 : vector<1x8xf32>
    %cst_45 = arith.constant 1.600000e+03 : f32
    %144 = vector.broadcast %cst_45 : f32 to vector<1x8xf32>
    %145 = arith.addf %143, %144 : vector<1x8xf32>
    %146 = vector.broadcast %69 : vector<6x1xf32> to vector<6x8xf32>
    %147 = vector.broadcast %145 : vector<1x8xf32> to vector<6x8xf32>
    %148 = arith.subf %146, %147 : vector<6x8xf32>
    %149 = arith.mulf %148, %148 : vector<6x8xf32>
    %cst_46 = arith.constant -2.000000e-06 : f32
    %150 = vector.broadcast %cst_46 : f32 to vector<6x8xf32>
    %151 = arith.mulf %149, %150 : vector<6x8xf32>
    %152 = math.exp %151 : vector<6x8xf32>
    %153 = arith.subf %134, %140 : vector<6x8xf32>
    %154 = arith.mulf %153, %153 : vector<6x8xf32>
    %155 = arith.subf %138, %141 : vector<6x8xf32>
    %156 = arith.mulf %155, %155 : vector<6x8xf32>
    %157 = arith.addf %154, %156 : vector<6x8xf32>
    %c2 = arith.constant 2 : index
    %158 = memref.load %arg10[%c2] : memref<4xf32, #tpu.memory_space<smem>>
    %159 = arith.mulf %152, %157 : vector<6x8xf32>
    %160 = vector.shape_cast %159 : vector<6x8xf32> to vector<1x6x8xf32>
    %cst_47 = arith.constant dense<0.000000e+00> : vector<1xf32>
    %161 = vector.multi_reduction <add>, %160, %cst_47 [1, 2] : vector<1x6x8xf32> to vector<1xf32>
    %162 = vector.shape_cast %161 : vector<1xf32> to vector<1x1x1xf32>
    %163 = vector.extract %162[0, 0, 0] : f32 from vector<1x1x1xf32>
    %164 = arith.addf %158, %163 : f32
    %c2_48 = arith.constant 2 : index
    %165 = memref.load %arg10[%c2_48] : memref<4xf32, #tpu.memory_space<smem>>
    memref.store %164, %arg10[%c2_48] : memref<4xf32, #tpu.memory_space<smem>>
    %c3 = arith.constant 3 : index
    %166 = memref.load %arg10[%c3] : memref<4xf32, #tpu.memory_space<smem>>
    %167 = vector.shape_cast %152 : vector<6x8xf32> to vector<1x6x8xf32>
    %cst_49 = arith.constant dense<0.000000e+00> : vector<1xf32>
    %168 = vector.multi_reduction <add>, %167, %cst_49 [1, 2] : vector<1x6x8xf32> to vector<1xf32>
    %169 = vector.shape_cast %168 : vector<1xf32> to vector<1x1x1xf32>
    %170 = vector.extract %169[0, 0, 0] : f32 from vector<1x1x1xf32>
    %171 = arith.addf %166, %170 : f32
    %c3_50 = arith.constant 3 : index
    %172 = memref.load %arg10[%c3_50] : memref<4xf32, #tpu.memory_space<smem>>
    memref.store %171, %arg10[%c3_50] : memref<4xf32, #tpu.memory_space<smem>>
    %c0_i32_51 = arith.constant 0 : i32
    %173 = arith.cmpi eq, %arg0, %c0_i32_51 : i32
    %174 = arith.extui %173 : i1 to i32
    %c0_i32_52 = arith.constant 0 : i32
    %175 = arith.cmpi ne, %174, %c0_i32_52 : i32
    scf.if %175 {
      %c0_53 = arith.constant 0 : index
      %176 = memref.load %arg10[%c0_53] : memref<4xf32, #tpu.memory_space<smem>>
      %cst_54 = arith.constant 1.250000e-01 : f32
      %177 = arith.mulf %176, %cst_54 : f32
      %c1_55 = arith.constant 1 : index
      %178 = memref.load %arg10[%c1_55] : memref<4xf32, #tpu.memory_space<smem>>
      %cst_56 = arith.constant 1.250000e-03 : f32
      %179 = arith.mulf %cst_56, %178 : f32
      %180 = arith.addf %177, %179 : f32
      %c2_57 = arith.constant 2 : index
      %181 = memref.load %arg10[%c2_57] : memref<4xf32, #tpu.memory_space<smem>>
      %c3_58 = arith.constant 3 : index
      %182 = memref.load %arg10[%c3_58] : memref<4xf32, #tpu.memory_space<smem>>
      %cst_59 = arith.constant 2.000000e+00 : f32
      %183 = arith.mulf %cst_59, %182 : f32
      %cst_60 = arith.constant 9.99999971E-10 : f32
      %184 = arith.addf %183, %cst_60 : f32
      %185 = arith.divf %181, %184 : f32
      %cst_61 = arith.constant 3.000000e-01 : f32
      %186 = arith.mulf %cst_61, %185 : f32
      %187 = arith.addf %180, %186 : f32
      %c0_62 = arith.constant 0 : index
      %c0_63 = arith.constant 0 : index
      %188 = memref.load %arg9[%c0_62, %c0_63] : memref<1x1xf32, #tpu.memory_space<smem>>
      memref.store %187, %arg9[%c0_62, %c0_63] : memref<1x1xf32, #tpu.memory_space<smem>>
    } else {
    }
    return
  }
  func.func @transform_0(%arg0: i32) -> (i32, i32) {
    %c0_i32 = arith.constant 0 : i32
    %c0_i32_0 = arith.constant 0 : i32
    return %c0_i32, %arg0 : i32, i32
  }
  func.func @transform_1(%arg0: i32) -> (i32, i32) {
    %c0_i32 = arith.constant 0 : i32
    %c0_i32_0 = arith.constant 0 : i32
    return %c0_i32, %arg0 : i32, i32
  }
  func.func @transform_2(%arg0: i32) -> (i32, i32) {
    %c0_i32 = arith.constant 0 : i32
    %c0_i32_0 = arith.constant 0 : i32
    return %c0_i32, %arg0 : i32, i32
  }
  func.func @transform_3(%arg0: i32) -> (i32, i32) {
    %c0_i32 = arith.constant 0 : i32
    %c0_i32_0 = arith.constant 0 : i32
    return %c0_i32, %arg0 : i32, i32
  }
  func.func @transform_4(%arg0: i32) -> (i32, i32) {
    %c0_i32 = arith.constant 0 : i32
    %c0_i32_0 = arith.constant 0 : i32
    return %c0_i32, %arg0 : i32, i32
  }
  func.func @transform_5(%arg0: i32) -> (i32, i32) {
    %c0_i32 = arith.constant 0 : i32
    %c0_i32_0 = arith.constant 0 : i32
    return %c0_i32, %arg0 : i32, i32
  }
  func.func @transform_6(%arg0: i32) -> (i32, i32) {
    %c0_i32 = arith.constant 0 : i32
    %c0_i32_0 = arith.constant 0 : i32
    return %c0_i32, %arg0 : i32, i32
  }
  func.func @transform_7(%arg0: i32) -> (i32, i32) {
    %c0_i32 = arith.constant 0 : i32
    %c0_i32_0 = arith.constant 0 : i32
    %c0_i32_1 = arith.constant 0 : i32
    return %c0_i32, %c0_i32_0 : i32, i32
  }
  func.func @transform_8(%arg0: i32) -> (i32, i32) {
    %c0_i32 = arith.constant 0 : i32
    %c0_i32_0 = arith.constant 0 : i32
    %c0_i32_1 = arith.constant 0 : i32
    return %c0_i32, %c0_i32_0 : i32, i32
  }
}

</mosaic_0001>

<bundles_post_ra>
// kernel: loss_fn.1
= control target key start
LH: loop header
LB: loop body
LE: loop exit
PB: predicated region body
PF: predicated region fallthrough
CT: control target
= control target key end

     0   :  { %v372_v1 = vmov 1   ;;  %v373_v3 = vmov 3   ;;  %s455_s0 = inlined_call_operand.vmem [shape: f32[12,8], index: 0, kind: input, shape index: {}]   ;;  %s456_s1 = inlined_call_operand.vmem [shape: f32[1,8], index: 1, kind: input, shape index: {}]   ;;  %s457_s2 = inlined_call_operand.vmem [shape: f32[1,8], index: 2, kind: input, shape index: {}]   ;;  %s458_s3 = inlined_call_operand.vmem [shape: f32[1,8], index: 3, kind: input, shape index: {}]   ;;  %s459_s4 = inlined_call_operand.vmem [shape: f32[1,8], index: 4, kind: input, shape index: {}]   ;;  %s460_s5 = inlined_call_operand.vmem [shape: f32[1,8], index: 5, kind: input, shape index: {}]   ;;  %s461_s6 = inlined_call_operand.vmem [shape: f32[1,8], index: 6, kind: input, shape index: {}]   ;;  %s462_s7 = inlined_call_operand.vmem [shape: f32[6,7], index: 7, kind: input, shape index: {}]   ;;  %s463_s8 = inlined_call_operand.hbm [shape: f32[1,1], index: 8, kind: output, shape index: {}]  }
   0x1   :  { %v119_v0 = vld [vmem:[%s462_s7] sm:$0x3f]  ;;  %337 = vset.pattern.permute.xlu1 %v372_v1  ;;  %335 = vset.pattern.permute.xlu0 %v372_v1 }
   0x2   :  { %v139_v2 = vmul.f32 0.3779577, %v119_v0  ;;  %135 = vperm.xlu1 %337, %v119_v0   ;;  %339 = vset.pattern.permute.xlu2 %v373_v3 }
   0x3   :  { %13 = vsyncpa [#allocation4], 0  ;;  %187 = vperm.xlu2 %339, %v119_v0   ;;  %v374_v4 = vmov 2   ;;  %v375_v5 = vmov 0   ;;  %v376_v6 = vmov 5   ;;  %v377_v7 = vmov 4  }
   0x4   :  { %145 = vperm.xlu0 %335, %v139_v2   ;;  %v378_v8 = vmov 6   ;;  %v43_v9 = vld [vmem:[%s457_s2] sm:$0x1]  ;;  %vm78_vm0 = vcmask 57344   ;;  %vm222_vm5 = vcmask 1041408   ;;  %vm232_vm7 = vcmask 62464  }
   0x5   :  { %v45_v10 = vld [vmem:[%s459_s4] sm:$0x1]  ;;  %v122_v43 = vmul.f32 400.0, %v43_v9  ;;  %s298_s29 = sshll.u32 %s463_s8, 4  ;;  %s379_s10 = smov [#allocation3]   ;;  %s299_s29 = int_to_ptr.hbm [resolvable:$true] %s298_s29 }
   0x6   :  { %v59_v11 = vsub.f32 %v43_v9, %v45_v10  ;;  %v47_v17 = vld [vmem:[%s461_s6] sm:$0x1]  ;;  %v208_v59 = vmul.f32 400.0, %v45_v10  ;;  %v207_v10 = vld [vmem:[%s455_s0 + $0x8] sm:$0xf] }
   0x7   :  { %v56_v18 = vsub.f32 0.0, %v47_v17  ;;  %v46_v20 = vld [vmem:[%s460_s5] sm:$0x1]  ;;  %v104_v44 = vmul.f32 %v47_v17, %v47_v17  ;;  %v123_v50 = vadd.f32 1600.0, %v122_v43 }
   0x8   :  { %v64_v12 = vand.u32 2147483647, %v59_v11  ;;  %v48_v21 = vsub.f32 0.0, %v46_v20  ;;  %v60_v26 = vmul.f32 %v59_v11, %v59_v11  ;;  %v42_v27 = vld [vmem:[%s456_s1] sm:$0x1]  ;;  %v93_v45 = vmul.f32 %v46_v20, %v46_v20 }
   0x9   :  { %v57_v19 = vmul.f32 1.442695, %v56_v18  ;;  %v44_v28 = vld [vmem:[%s458_s3] sm:$0x1]  ;;  %v105_v47 = vsel %vm78_vm0, %v104_v44, 0.0  ;;  %v120_v51 = vmul.f32 20.0, %v42_v27 }
   0xa   :  { %338 = vset.pattern.permute.xlu1 %v374_v4  ;;  %v65_v13 = vmul.f32 0.25, %v64_v12  ;;  %v49_v23 = vmul.f32 1.442695, %v48_v21  ;;  %v51_v31 = vsub.f32 %v42_v27, %v44_v28  ;;  %v94_v48 = vsel %vm78_vm0, %v93_v45, 0.0 }
   0xb   :  { %175 = vperm.xlu1 %338, %v119_v0   ;;  %340 = vset.pattern.permute.xlu2 %v376_v6  ;;  %v126_v52 = vmul.f32 -0.00054054055, %v123_v50  ;;  %v121_v53 = vadd.f32 60.0, %v120_v51  ;;  %v209_v2 = vadd.f32 1600.0, %v208_v59  ;;  %v309_v4 = vadd.f32 -1800.0, %v123_v50 }
   0xc   :  { %336 = vset.pattern.permute.xlu0 %v375_v5  ;;  %197 = vperm.xlu2 %340, %v119_v0   ;;  %v66_v14 = vmax.f32 %v65_v13, 0.0  ;;  %v52_v33 = vmul.f32 %v51_v31, %v51_v31  ;;  %v158_v11 = vperm.slane %v123_v50, 0  ;;  %v224_v21 = vrot.slane %v207_v10, 6 }
   0xd   :  { %154 = vperm.xlu0 %336, %v119_v0   ;;  %v127_v54 = vmul.f32 1.442695, %v126_v52  ;;  %v125_v56 = vmul.f32 0.00020740741, %v121_v53  ;;  %v124_v57 = vmul.f32 0.0005824074, %v121_v53 }
   0xe   :  { %v67_v15 = vmin.f32 %v66_v14, 1.0  ;;  %v211_v9 = vperm.slane %v209_v2, 0  ;;  %v164_v14 = vperm.slane %v309_v4, 0 }
   0xf   :  { %v179_v58 = vmul.f32 %v125_v56, %v123_v50  ;;  %v129_v63 = vmul.f32 0.6220423, %v124_v57  ;;  %v150_v13 = vperm.slane %v124_v57, 0 }
  0x10   :  { %v68_v16 = vadd.f32 0.1, %v67_v15 }
  0x11   :  { %v131_v5 = vperm.slane %v129_v63, 0 }
  0x12   :  { %344 = vlog2.f32 %v68_v16 }
  0x13   :  { %341 = vset.pattern.permute.xlu1 %v377_v7  ;;  %346 = vpow2.f32 %v57_v19  ;;  %v172_v7 = vperm.slane %v125_v56, 0 }
  0x14   :  { %192 = vperm.xlu1 %341, %v119_v0   ;;  %342 = vset.pattern.permute.xlu2 %v378_v8  ;;  %348 = vpow2.f32 %v49_v23 }
  0x15   :  { %343 = vset.pattern.permute.xlu0 %v378_v8  ;;  %202 = vperm.xlu2 %342, %v119_v0   ;;  %v180_v0 = vmul.f32 0.001, %v179_v58  ;;  %v206_v8 = vld [vmem:[%s455_s0] sm:$0xff] }
  0x16   :  { %v223_v16 = vrot.slane %v206_v8, 6 }
  0x17   :  { %v182_v6 = vperm.slane %v180_v0, 0 }
  0x18   :  { %v345_v22 = vpop.eup %344 }
  0x19   :  { %v70_v24 = vmul.f32 0.6931472, %v345_v22  ;;  %v347_v30 = vpop.eup %346 }
  0x1a   :  { %v61_v32 = vmul.f32 %v347_v30, %v60_v26  ;;  %v349_v34 = vpop.eup %348 }
  0x1b   :  { %v71_v25 = vmul.f32 1.5, %v70_v24  ;;  %v53_v36 = vmul.f32 %v349_v34, %v52_v33 }
  0x1c   :  { %v62_v35 = vadd.f32 %v61_v32, %v47_v17  ;;  %v225_v32 = vsel %vm222_vm5, %v223_v16, %v224_v21 }
  0x1d   :  { %v72_v29 = vmul.f32 1.442695, %v71_v25  ;;  %v54_v38 = vadd.f32 %v53_v36, %v46_v20 }
  0x1e   :  { %v63_v37 = vmul.f32 0.5, %v62_v35 }
  0x1f   :  { %350 = vpow2.f32 %v72_v29  ;;  %v55_v41 = vmul.f32 0.5, %v54_v38 }
  0x20   :  { %v74_v40 = vmul.f32 0.6666667, %v63_v37  ;;  %352 = vpow2.f32 %v127_v54 }
  0x25   :  { %v351_v39 = vpop.eup %350 }
  0x26   :  { %v75_v42 = vmul.f32 %v351_v39, %v74_v40  ;;  %v353_v61 = vpop.eup %352 }
  0x27   :  { %v141_v3 = vperm.slane %v353_v61, 0 }
  0x28   :  { %v76_v46 = vadd.f32 %v75_v42, %v55_v41 }
  0x2a   :  { %v79_v49 = vsel %vm78_vm0, %v76_v46, 0.0 }
  0x37   :  { %80 = vadd.xlane.f32.xlu0 %v79_v49 }
  0x3e   :  { %106 = vadd.xlane.f32.xlu2 %v105_v47  ;;  %95 = vadd.xlane.f32.xlu1 %v94_v48 }
  0x5d   :  { %v188_v55 = vpop.permute.xlu2 %187 }
  0x66   :  { %v198_v1 = vpop.permute.xlu2 %197 }
  0x6f   :  { %v203_v24 = vpop.permute.xlu2 %202 }
  0x74   :  { %v136_v60 = vpop.permute.xlu1 %135 }
  0x75   :  { %v138_v17 = vmul.f32 %v136_v60, %v131_v5  ;;  %v184_v18 = vmul.f32 %v182_v6, %v136_v60 }
  0x76   :  { %v146_v62 = vpop.permute.xlu0 %145 }
  0x77   :  { %v148_v12 = vsub.f32 %v141_v3, %v146_v62 }
  0x79   :  { %v152_v23 = vmul.f32 %v150_v13, %v148_v12 }
  0x7d   :  { %v176_v15 = vpop.permute.xlu1 %175 }
  0x7e   :  { %v178_v19 = vmul.f32 %v176_v15, %v172_v7 }
  0x7f   :  { %v155_v20 = vpop.permute.xlu0 %154 }
  0x80   :  { %v213_v22 = vsub.f32 %v155_v20, %v211_v9  ;;  %vm170_vm1 = vcmp.le.f32.partialorder %v155_v20, %v158_v11  ;;  %vm160_vm2 = vcmp.ge.f32.partialorder %v155_v20, %v158_v11  ;;  %vm161_vm3 = vcmp.lt.f32.partialorder %v155_v20, %v158_v11 }
  0x81   :  { %v185_v25 = vsel %vm170_vm1, %v178_v19, %v184_v18  ;;  %vm166_vm4 = vcmp.ge.f32.partialorder %v155_v20, %v164_v14  ;;  %v168_v26 = vsel %vm160_vm2, %v138_v17, 0.0 }
  0x82   :  { %v200_v27 = vsub.f32 %v185_v25, %v198_v1  ;;  %vm167_vm6 = vmand %vm161_vm3, %vm166_vm4  ;;  %v214_v28 = vmul.f32 %v213_v22, %v213_v22 }
  0x83   :  { %v169_v29 = vsel %vm167_vm6, %v152_v23, %v168_v26 }
  0x84   :  { %v205_v30 = vmul.f32 %v203_v24, %v200_v27  ;;  %v215_v31 = vmul.f32 -2e-06, %v214_v28  ;;  %v190_v33 = vsub.f32 %v169_v29, %v188_v55 }
  0x86   :  { %v216_v34 = vmul.f32 1.442695, %v215_v31  ;;  %v193_v35 = vpop.permute.xlu1 %192  ;;  %v227_v36 = vsub.f32 %v205_v30, %v225_v32 }
  0x87   :  { %v195_v37 = vmul.f32 %v193_v35, %v190_v33 }
  0x88   :  { %354 = vpow2.f32 %v216_v34  ;;  %v228_v39 = vmul.f32 %v227_v36, %v227_v36 }
  0x89   :  { %v218_v38 = vsub.f32 %v195_v37, %v206_v8 }
  0x8b   :  { %v219_v40 = vmul.f32 %v218_v38, %v218_v38 }
  0x8d   :  { %v229_v42 = vadd.f32 %v228_v39, %v219_v40 }
  0x8e   :  { %v355_v41 = vpop.eup %354 }
  0x8f   :  { %v247_v43 = vsel %vm232_vm7, %v355_v41, 0.0  ;;  %v231_v44 = vmul.f32 %v355_v41, %v229_v42 }
  0x90   :  { %248 = vadd.xlane.f32.xlu0 %v247_v43 }
  0x91   :  { %v233_v45 = vsel %vm232_vm7, %v231_v44, 0.0 }
  0x92   :  { %234 = vadd.xlane.f32.xlu2 %v233_v45 }
  0xaa   :  { %v81_v50 = vpop.xlane.xlu0 %80 }
  0xab   :  { %v82_v51 = vrot.slane %v81_v50, 4 }
  0xad   :  { %v83_v54 = vadd.f32 %v82_v51, %v81_v50 }
  0xaf   :  { %v84_v57 = vrot.slane %v83_v54, 2 }
  0xb1   :  { %v107_v46 = vpop.xlane.xlu2 %106  ;;  %v96_v47 = vpop.xlane.xlu1 %95  ;;  %v85_v60 = vadd.f32 %v84_v57, %v83_v54 }
  0xb2   :  { %v108_v48 = vrot.slane %v107_v46, 4  ;;  %v97_v49 = vrot.slane %v96_v47, 4 }
  0xb3   :  { %v86_v63 = vrot.slane %v85_v60, 1 }
  0xb4   :  { %v109_v52 = vadd.f32 %v108_v48, %v107_v46  ;;  %v98_v53 = vadd.f32 %v97_v49, %v96_v47 }
  0xb5   :  { %v87_v1 = vadd.f32 %v86_v63, %v85_v60 }
  0xb6   :  { %v110_v55 = vrot.slane %v109_v52, 2  ;;  %v99_v56 = vrot.slane %v98_v53, 2 }
  0xb7   :  { %315 = vpush %v87_v1 }
  0xb8   :  { %v100_v58 = vadd.f32 %v99_v56, %v98_v53  ;;  %v111_v59 = vadd.f32 %v110_v55, %v109_v52 }
  0xba   :  { %v101_v61 = vrot.slane %v100_v58, 1  ;;  %v112_v62 = vrot.slane %v111_v59, 1 }
  0xbc   :  { %v102_v0 = vadd.f32 %v101_v61, %v100_v58  ;;  %v113_v2 = vadd.f32 %v112_v62, %v111_v59 }
  0xbe   :  { %317 = vpush %v102_v0 }
  0xbf   :  { %319 = vpush %v113_v2 }
  0xe8   :  { %s316_s0 = spop %315 }
  0xe9   :  { %s264_s18 = smul.f32 0.125, %s316_s0 }
  0xef   :  { %s318_s16 = spop %317 }
  0xf0   :  { %s320_s17 = spop %319 }
  0xf1   :  { %s115_s19 = sadd.f32 %s320_s17, %s318_s16 }
  0xf3   :  { %s266_s20 = smul.f32 0.00125, %s115_s19 }
  0xf5   :  { %s267_s21 = sadd.f32 %s266_s20, %s264_s18 }
 0x103   :  { %v249_v3 = vpop.xlane.xlu0 %248 }
 0x104   :  { %v250_v4 = vrot.slane %v249_v3, 4 }
 0x105   :  { %v235_v6 = vpop.xlane.xlu2 %234 }
 0x106   :  { %v251_v5 = vadd.f32 %v250_v4, %v249_v3  ;;  %v236_v7 = vrot.slane %v235_v6, 4 }
 0x108   :  { %v252_v8 = vrot.slane %v251_v5, 2  ;;  %v237_v9 = vadd.f32 %v236_v7, %v235_v6 }
 0x10a   :  { %v253_v10 = vadd.f32 %v252_v8, %v251_v5  ;;  %v238_v11 = vrot.slane %v237_v9, 2 }
 0x10c   :  { %v239_v12 = vadd.f32 %v238_v11, %v237_v9  ;;  %v254_v13 = vrot.slane %v253_v10, 1 }
 0x10e   :  { %v240_v14 = vrot.slane %v239_v12, 1  ;;  %v255_v16 = vadd.f32 %v254_v13, %v253_v10 }
 0x110   :  { %v241_v15 = vadd.f32 %v240_v14, %v239_v12 }
 0x112   :  { %321 = vpush %v241_v15 }
 0x113   :  { %323 = vpush %v255_v16 }
 0x143   :  { %s322_s22 = spop %321 }
 0x144   :  { %s324_s23 = spop %323 }
 0x145   :  { %s270_s24 = smul.f32 2.0, %s324_s23 }
 0x147   :  { %s271_s25 = sadd.f32 1e-09, %s270_s24 }
 0x149   :  { %v272_v17 = vstv %s271_s25 }
 0x14a   :  { %356 = vrcp.f32 %v272_v17  ;;  %v284_v21 = vand.u32 2147483648, %v272_v17  ;;  %v282_v23 = vand.u32 2147483647, %v272_v17  ;;  %vm278_vm9 = vweird.f32 %v272_v17 }
 0x14c   :  { %v285_v25 = vor.u32 1.1754944e-38, %v284_v21  ;;  %vm283_vm11 = vcmp.eq.f32.partialorder %v282_v23, 8.507059e+37 }
 0x150   :  { %v357_v18 = vpop.eup %356 }
 0x151   :  { %v274_v19 = vmul.f32 %v357_v18, %v272_v17  ;;  %vm279_vm8 = vweird.f32 %v357_v18 }
 0x152   :  { %vm280_vm10 = vmor %vm278_vm9, %vm279_vm8 }
 0x153   :  { %v275_v20 = vsub.f32 1.0, %v274_v19 }
 0x155   :  { %v276_v22 = vmul.f32 %v357_v18, %v275_v20 }
 0x157   :  { %v277_v24 = vadd.f32 %v357_v18, %v276_v22 }
 0x159   :  { %v281_v26 = vsel %vm280_vm10, %v357_v18, %v277_v24 }
 0x15a   :  { %v286_v27 = vsel %vm283_vm11, %v285_v25, %v281_v26 }
 0x15b   :  { %325 = vpush %v286_v27 }
 0x18c   :  { %s326_s26 = spop %325 }
 0x18d   :  { %s288_s27 = smul.f32 %s326_s26, %s322_s22 }
 0x18f   :  { %s289_s30 = smul.f32 0.3, %s288_s27 }
 0x191   :  { %s290_s9 = sadd.f32 %s289_s30, %s267_s21 }
 0x193   :  { %292 = sst [smem:[#allocation3]] %s290_s9 }
 0x194   :  { %301 = dma.smem_to_hbm %s379_s10, 16, %s299_s29, [#allocation4]  }
 0x195   :  { %370 = dma.done.wait [#allocation4], 16  }
 0x196   :  { %371 = vsyncadd [#allocation4], 4294967280 }
 0x197   :  { %306 = sfence }
 0x198   :  { %307 = vsyncpa [#allocation4], 1 }

</bundles_post_ra>
